<compile_context>
chip_gen: v5e
topology: v5e:2x2
jax: 0.10.0
libtpu: 0.0.40
codegen_flags: <defaults>
</compile_context>

<pallas_src>
import functools

import jax
import jax.numpy as jnp
from jax.experimental import pallas as pl
from jax.experimental.pallas import tpu as pltpu

EPS = 1e-5

# Fuse stats + conv into one kernel when the estimated VMEM working set is below this.
_FUSE_VMEM_BYTES = 2 * 1024 * 1024
# Target HBM->VMEM input-block size for the row-batched (two-pass) path.
_TARGET_IN_BLOCK_BYTES = 512 * 1024
# Keep the double-buffered working set comfortably under the scoped-VMEM defaults.
_VMEM_BUDGET_BYTES = 8 * 1024 * 1024
# Cap rows/step: the per-tap batched dots unroll over the row dimension (IR/compile size).
_MAX_ROWS_PER_STEP = 128


def _fold_bn(sum_c, sq_c, gamma, beta, inv_count):
    """Per-channel (sum, sum_sq) -> fused BN scale/shift (all (C_in, 1) f32)."""
    mean = sum_c * inv_count
    # Biased variance via E[x^2] - mean^2; clamp at 0 (catastrophic-cancellation guard).
    var = jnp.maximum(sq_c * inv_count - mean * mean, 0.0)
    inv = jax.lax.rsqrt(var + EPS)
    scale = gamma * inv
    shift = beta - mean * scale
    return scale, shift


def _bn_relu_conv_rows(x, scale, shift, wt, bias, xpad_ref):
    """Normalize + ReLU + 'same' Conv1d for a block of batch rows.

    x:        (NB, C_in, L)          input rows
    scale:    (C_in, 1)  f32         fused BN scale  (gamma / sqrt(var + eps))
    shift:    (C_in, 1)  f32         fused BN shift  (beta - mean * scale)
    wt:       (K, C_out, C_in) f32   tap-major conv weight (VMEM-resident)
    bias:     (C_out, 1) f32
    xpad_ref: (NB, C_in, L + 2*(K//2)) f32 VMEM scratch (zero-padded halo)
    returns   (NB, C_out, L) f32
    """
    nb, c_in, length = x.shape
    k_size, c_out, _ = wt.shape
    pad = k_size // 2

    # BN folded into a single FMA, then ReLU (pure VPU work, vectorized over all rows).
    xn = jnp.maximum(x.astype(jnp.float32) * scale + shift, 0.0)

    # Zero-padded halo copy: every tap below is a plain lane slice of the scratch, so
    # there are no shift matmuls, rolls, or per-tap edge masks at all.
    xpad_ref[...] = jnp.zeros_like(xpad_ref)
    xpad_ref[:, :, pad:pad + length] = xn

    acc = jnp.zeros((nb, c_out, length), jnp.float32)
    for k in range(k_size):                       # K is small & static -> unrolled
        xk = xpad_ref[:, :, k:k + length]         # == x shifted by (k - pad), zero edges
        wk = jnp.broadcast_to(wt[k], (nb, c_out, c_in))
        # Contraction depth is only C_in, so HIGHEST precision is essentially free and
        # keeps the result bit-close to the f32 reference (review correctness note).
        acc = acc + jnp.einsum(
            "noi,nil->nol", wk, xk,
            preferred_element_type=jnp.float32,
            precision=jax.lax.Precision.HIGHEST)
    return acc + bias


def _fused_kernel(x_ref, gamma_ref, beta_ref, wt_ref, b_ref, o_ref, xpad_ref, *, inv_count):
    """Single-call path: batch stats + normalize + ReLU + conv, whole problem in VMEM."""
    x = x_ref[...].astype(jnp.float32)                 # (N, C_in, L)
    s = jnp.sum(x, axis=0)                             # (C_in, L)
    q = jnp.sum(x * x, axis=0)
    sum_c = jnp.sum(s, axis=1, keepdims=True)          # (C_in, 1)
    sq_c = jnp.sum(q, axis=1, keepdims=True)
    scale, shift = _fold_bn(sum_c, sq_c, gamma_ref[...], beta_ref[...], inv_count)
    out = _bn_relu_conv_rows(x, scale, shift, wt_ref[...], b_ref[...], xpad_ref)
    o_ref[...] = out.astype(o_ref.dtype)


def _stats_kernel(x_ref, gamma_ref, beta_ref, scale_ref, shift_ref, sum_ref, sq_ref,
                  *, inv_count, n_rows, rows_per_step):
    """Row-batched per-channel batch stats -> fused BN scale/shift."""
    i = pl.program_id(0)

    @pl.when(i == 0)
    def _init():
        sum_ref[...] = jnp.zeros_like(sum_ref)
        sq_ref[...] = jnp.zeros_like(sq_ref)

    x = x_ref[...].astype(jnp.float32)                 # (NB, C_in, L)
    if n_rows % rows_per_step != 0:
        # Final block is padded past N; zero the out-of-range rows so they do not
        # pollute the sums (zero rows contribute 0 to both sum and sum-of-squares).
        row = jax.lax.broadcasted_iota(jnp.int32, x.shape, 0)
        x = jnp.where(row + i * rows_per_step < n_rows, x, 0.0)
    s = jnp.sum(x, axis=0)                             # (C_in, L)
    q = jnp.sum(x * x, axis=0)
    sum_ref[...] += jnp.sum(s, axis=1, keepdims=True)  # one sweep over the block
    sq_ref[...] += jnp.sum(q, axis=1, keepdims=True)

    @pl.when(i == pl.num_programs(0) - 1)
    def _finalize():
        scale, shift = _fold_bn(sum_ref[...], sq_ref[...],
                                gamma_ref[...], beta_ref[...], inv_count)
        scale_ref[...] = scale
        shift_ref[...] = shift


def _conv_kernel(x_ref, scale_ref, shift_ref, wt_ref, b_ref, o_ref, xpad_ref):
    out = _bn_relu_conv_rows(x_ref[...], scale_ref[...], shift_ref[...],
                             wt_ref[...], b_ref[...], xpad_ref)
    o_ref[...] = out.astype(o_ref.dtype)


def _choose_rows_per_step(n, c_in, c_out, k_size, length):
    in_row = 4 * c_in * length                     # f32 bytes per input row in VMEM
    out_row = 4 * c_out * length
    # ~512 KiB input blocks: large enough to amortize the ~0.35 us/step cost and keep
    # the HBM DMA pipeline near the roofline (measured ~85% at 512-element-class tiles).
    nb = max(1, _TARGET_IN_BLOCK_BYTES // in_row)
    # Double-buffered in/out blocks + halo copy + broadcast weight slabs must stay well
    # inside the scoped-VMEM defaults (16 MiB v5e, 32 MiB v6e/v7x; 64 MiB physical v7x).
    per_row = 2 * (in_row + out_row) + 2 * in_row + 4096
    nb = min(nb, max(1, _VMEM_BUDGET_BYTES // per_row))
    nb = min(nb, _MAX_ROWS_PER_STEP)
    # v7x megacore: keep at least two "parallel" grid steps so the second TensorCore
    # has work (neutral on single-TC v5e/v6e).
    nb = min(nb, max(1, -(-n // 2)))
    return min(nb, n)


def bn_relu_conv(x, gamma, beta, w, b):
    """x: (N, C_in, L); w: (C_out, C_in, K); returns (N, C_out, L).

    Matches PyTorch BNReLUConv.forward with training-mode BatchNorm1d statistics.
    """
    n, c_in, length = x.shape
    c_out, c_in_w, k_size = w.shape
    assert c_in_w == c_in
    assert k_size % 2 == 1, "even kernel_size needs asymmetric padding (PyTorch pads K//2 both sides)"
    pad = k_size // 2

    gamma2 = gamma.reshape(c_in, 1).astype(jnp.float32)
    beta2 = beta.reshape(c_in, 1).astype(jnp.float32)
    wt = jnp.transpose(w, (2, 0, 1)).astype(jnp.float32)     # (K, C_out, C_in), tap-major
    b2 = b.reshape(c_out, 1).astype(jnp.float32)
    inv_count = 1.0 / float(n * length)

    conv_flops = 2 * n * c_out * c_in * k_size * length + 4 * n * c_in * length
    bytes_x = int(n * c_in * length * x.dtype.itemsize)
    bytes_o = int(n * c_out * length * x.dtype.itemsize)

    # ---- Fully fused path: stats + normalize + ReLU + conv in one pallas_call ----
    fused_ws = 4 * n * length * (3 * c_in + 2 * c_out) + 4096 * n
    if fused_ws <= _FUSE_VMEM_BYTES:
        # NOTE: grid=(1,) leaves v7x's second TensorCore idle, but at these sizes the
        # second HBM read of x and the extra launch of the two-pass path cost more.
        return pl.pallas_call(
            functools.partial(_fused_kernel, inv_count=inv_count),
            out_shape=jax.ShapeDtypeStruct((n, c_out, length), x.dtype),
            grid=(1,),
            in_specs=[
                pl.BlockSpec((n, c_in, length), lambda i: (0, 0, 0)),
                pl.BlockSpec((c_in, 1), lambda i: (0, 0)),
                pl.BlockSpec((c_in, 1), lambda i: (0, 0)),
                pl.BlockSpec((k_size, c_out, c_in), lambda i: (0, 0, 0)),
                pl.BlockSpec((c_out, 1), lambda i: (0, 0)),
            ],
            out_specs=pl.BlockSpec((n, c_out, length), lambda i: (0, 0, 0)),
            scratch_shapes=[pltpu.VMEM((n, c_in, length + 2 * pad), jnp.float32)],
            compiler_params=pltpu.CompilerParams(
                dimension_semantics=("arbitrary",)),
            cost_estimate=pl.CostEstimate(
                flops=conv_flops, transcendentals=c_in,
                bytes_accessed=bytes_x + bytes_o),
        )(x, gamma2, beta2, wt, b2)

    # ---- Two-pass path: row-batched stats, then row-batched normalize+ReLU+conv ----
    nb = _choose_rows_per_step(n, c_in, c_out, k_size, length)
    grid_n = pl.cdiv(n, nb)

    scale, shift = pl.pallas_call(
        functools.partial(_stats_kernel, inv_count=inv_count,
                          n_rows=n, rows_per_step=nb),
        out_shape=(jax.ShapeDtypeStruct((c_in, 1), jnp.float32),
                   jax.ShapeDtypeStruct((c_in, 1), jnp.float32)),
        grid=(grid_n,),
        in_specs=[
            pl.BlockSpec((nb, c_in, length), lambda i: (i, 0, 0)),
            pl.BlockSpec((c_in, 1), lambda i: (0, 0)),
            pl.BlockSpec((c_in, 1), lambda i: (0, 0)),
        ],
        out_specs=(pl.BlockSpec((c_in, 1), lambda i: (0, 0)),
                   pl.BlockSpec((c_in, 1), lambda i: (0, 0))),
        scratch_shapes=[pltpu.VMEM((c_in, 1), jnp.float32),
                        pltpu.VMEM((c_in, 1), jnp.float32)],
        compiler_params=pltpu.CompilerParams(
            dimension_semantics=("arbitrary",)),   # accumulates across the batch axis
        cost_estimate=pl.CostEstimate(
            flops=3 * n * c_in * length, transcendentals=c_in,
            bytes_accessed=bytes_x),
    )(x, gamma2, beta2)

    # TODO(synk): for very long L, additionally tile the length axis (multiples of 128
    # lanes with a K//2 halo) instead of carrying a full (nb, C_in, L) row block.
    out = pl.pallas_call(
        _conv_kernel,
        out_shape=jax.ShapeDtypeStruct((n, c_out, length), x.dtype),
        grid=(grid_n,),
        in_specs=[
            pl.BlockSpec((nb, c_in, length), lambda i: (i, 0, 0)),
            pl.BlockSpec((c_in, 1), lambda i: (0, 0)),
            pl.BlockSpec((c_in, 1), lambda i: (0, 0)),
            pl.BlockSpec((k_size, c_out, c_in), lambda i: (0, 0, 0)),  # weights resident
            pl.BlockSpec((c_out, 1), lambda i: (0, 0)),
        ],
        out_specs=pl.BlockSpec((nb, c_out, length), lambda i: (i, 0, 0)),
        scratch_shapes=[pltpu.VMEM((nb, c_in, length + 2 * pad), jnp.float32)],
        compiler_params=pltpu.CompilerParams(
            dimension_semantics=("parallel",)),    # independent row blocks (v7x megacore)
        cost_estimate=pl.CostEstimate(
            flops=conv_flops, transcendentals=0,
            bytes_accessed=bytes_x + bytes_o),
    )(x, scale, shift, wt, b2)
    return out


def reference_forward(x, gamma, beta, w, b):
    """Pure-JAX reference matching PyTorch BNReLUConv.forward (training-mode BN)."""
    mean = x.mean(axis=(0, 2), keepdims=True)
    var = ((x - mean) ** 2).mean(axis=(0, 2), keepdims=True)
    xn = (x - mean) / jnp.sqrt(var + EPS)
    xn = xn * gamma.reshape(1, -1, 1) + beta.reshape(1, -1, 1)
    xn = jnp.maximum(xn, 0.0)
    pad = w.shape[-1] // 2
    out = jax.lax.conv_general_dilated(
        xn, w, window_strides=(1,), padding=[(pad, pad)],
        dimension_numbers=("NCH", "OIH", "NCH"),
        precision=jax.lax.Precision.HIGHEST,
    )
    return out + b.reshape(1, -1, 1)


def _run_case(n, c_in, c_out, length, k_size, case):
    key = jax.random.fold_in(jax.random.PRNGKey(0), case)
    kx, kg, kb, kw, kc = jax.random.split(key, 5)
    x = jax.random.normal(kx, (n, c_in, length), dtype=jnp.float32)
    # Deterministic synthetic parameters (NOT a checkpoint load).
    gamma = 1.0 + 0.1 * jax.random.normal(kg, (c_in,), dtype=jnp.float32)   # BN weight
    beta = 0.1 * jax.random.normal(kb, (c_in,), dtype=jnp.float32)          # BN bias
    w = 0.3 * jax.random.normal(kw, (c_out, c_in, k_size), dtype=jnp.float32)
    b = 0.1 * jax.random.normal(kc, (c_out,), dtype=jnp.float32)

    out = jax.block_until_ready(bn_relu_conv(x, gamma, beta, w, b))
    ref = jax.block_until_ready(reference_forward(x, gamma, beta, w, b))
    assert out.shape == (n, c_out, length)
    max_err = float(jnp.max(jnp.abs(out - ref)))
    assert jnp.allclose(out, ref, atol=1e-3, rtol=1e-3), (
        f"mismatch vs. reference (case {case}): {max_err}")


if __name__ == "__main__":
    # BNReLUConv(in_channels=4, out_channels=8, kernel_size=3); L=128 keeps the lane
    # (minor) axis dense.  Small case exercises the fully fused single-kernel path.
    _run_case(2, 4, 8, 128, 3, case=0)
    # Larger case exercises the row-batched two-pass path (stats grid + parallel conv grid).
    _run_case(48, 4, 8, 512, 3, case=1)

    # TODO(synk): BatchNorm running_mean/running_var updates are module-state mutation
    # with no effect on this forward output; not modeled here.
    print("KERNEL_OK")
</pallas_src>

<mosaic_0001>
module attributes {stable_mosaic.version = 11 : i64} {
  func.func @_fused_kernel(%arg0: i32, %arg1: memref<2x4x128xf32, #tpu.memory_space<vmem>>, %arg2: memref<4x1xf32, #tpu.memory_space<vmem>>, %arg3: memref<4x1xf32, #tpu.memory_space<vmem>>, %arg4: memref<3x8x4xf32, #tpu.memory_space<vmem>>, %arg5: memref<8x1xf32, #tpu.memory_space<vmem>>, %arg6: memref<2x8x128xf32, #tpu.memory_space<vmem>>, %arg7: memref<2x4x130xf32, #tpu.memory_space<vmem>>) attributes {dimension_semantics = [#tpu.dimension_semantics<arbitrary>], iteration_bounds = array<i64: 1>, scalar_prefetch = 0 : i64, scratch_operands = 1 : i64, tpu.core_type = #tpu.core_type<tc>, window_params = [{pipeline_mode = #tpu.pipeline_mode<synchronous>, transform_indices = @transform_0, window_bounds = array<i64: 2, 4, 128>}, {pipeline_mode = #tpu.pipeline_mode<synchronous>, transform_indices = @transform_1, window_bounds = array<i64: 4, 1>}, {pipeline_mode = #tpu.pipeline_mode<synchronous>, transform_indices = @transform_2, window_bounds = array<i64: 4, 1>}, {pipeline_mode = #tpu.pipeline_mode<synchronous>, transform_indices = @transform_3, window_bounds = array<i64: 3, 8, 4>}, {pipeline_mode = #tpu.pipeline_mode<synchronous>, transform_indices = @transform_4, window_bounds = array<i64: 8, 1>}, {pipeline_mode = #tpu.pipeline_mode<synchronous>, transform_indices = @transform_5, window_bounds = array<i64: 2, 8, 128>}]} {
    %c0 = arith.constant 0 : index
    %c0_0 = arith.constant 0 : index
    %c0_1 = arith.constant 0 : index
    %0 = vector.load %arg1[%c0, %c0_0, %c0_1] : memref<2x4x128xf32, #tpu.memory_space<vmem>>, vector<2x4x128xf32>
    %cst = arith.constant dense<0.000000e+00> : vector<4x128xf32>
    %1 = vector.multi_reduction <add>, %0, %cst [0] : vector<2x4x128xf32> to vector<4x128xf32>
    %2 = arith.mulf %0, %0 : vector<2x4x128xf32>
    %cst_2 = arith.constant dense<0.000000e+00> : vector<4x128xf32>
    %3 = vector.multi_reduction <add>, %2, %cst_2 [0] : vector<2x4x128xf32> to vector<4x128xf32>
    %cst_3 = arith.constant dense<0.000000e+00> : vector<4xf32>
    %4 = vector.multi_reduction <add>, %1, %cst_3 [1] : vector<4x128xf32> to vector<4xf32>
    %5 = vector.shape_cast %4 : vector<4xf32> to vector<4x1xf32>
    %cst_4 = arith.constant dense<0.000000e+00> : vector<4xf32>
    %6 = vector.multi_reduction <add>, %3, %cst_4 [1] : vector<4x128xf32> to vector<4xf32>
    %7 = vector.shape_cast %6 : vector<4xf32> to vector<4x1xf32>
    %c0_5 = arith.constant 0 : index
    %c0_6 = arith.constant 0 : index
    %8 = vector.load %arg2[%c0_5, %c0_6] : memref<4x1xf32, #tpu.memory_space<vmem>>, vector<4x1xf32>
    %c0_7 = arith.constant 0 : index
    %c0_8 = arith.constant 0 : index
    %9 = vector.load %arg3[%c0_7, %c0_8] : memref<4x1xf32, #tpu.memory_space<vmem>>, vector<4x1xf32>
    %cst_9 = arith.constant 3.906250e-03 : f32
    %10 = vector.broadcast %cst_9 : f32 to vector<4x1xf32>
    %11 = arith.mulf %5, %10 : vector<4x1xf32>
    %cst_10 = arith.constant 3.906250e-03 : f32
    %12 = vector.broadcast %cst_10 : f32 to vector<4x1xf32>
    %13 = arith.mulf %7, %12 : vector<4x1xf32>
    %14 = arith.mulf %11, %11 : vector<4x1xf32>
    %15 = arith.subf %13, %14 : vector<4x1xf32>
    %cst_11 = arith.constant 0.000000e+00 : f32
    %16 = vector.broadcast %cst_11 : f32 to vector<4x1xf32>
    %17 = arith.maximumf %15, %16 : vector<4x1xf32>
    %cst_12 = arith.constant 9.99999974E-6 : f32
    %18 = vector.broadcast %cst_12 : f32 to vector<4x1xf32>
    %19 = arith.addf %17, %18 : vector<4x1xf32>
    %20 = math.rsqrt %19 : vector<4x1xf32>
    %21 = arith.mulf %8, %20 : vector<4x1xf32>
    %22 = arith.mulf %11, %21 : vector<4x1xf32>
    %23 = arith.subf %9, %22 : vector<4x1xf32>
    %c0_13 = arith.constant 0 : index
    %c0_14 = arith.constant 0 : index
    %c0_15 = arith.constant 0 : index
    %24 = vector.load %arg4[%c0_13, %c0_14, %c0_15] : memref<3x8x4xf32, #tpu.memory_space<vmem>>, vector<3x8x4xf32>
    %c0_16 = arith.constant 0 : index
    %c0_17 = arith.constant 0 : index
    %25 = vector.load %arg5[%c0_16, %c0_17] : memref<8x1xf32, #tpu.memory_space<vmem>>, vector<8x1xf32>
    %26 = vector.shape_cast %21 : vector<4x1xf32> to vector<1x4x1xf32>
    %27 = vector.broadcast %26 : vector<1x4x1xf32> to vector<2x4x128xf32>
    %28 = arith.mulf %0, %27 : vector<2x4x128xf32>
    %29 = vector.shape_cast %23 : vector<4x1xf32> to vector<1x4x1xf32>
    %30 = vector.broadcast %29 : vector<1x4x1xf32> to vector<2x4x128xf32>
    %31 = arith.addf %28, %30 : vector<2x4x128xf32>
    %cst_18 = arith.constant 0.000000e+00 : f32
    %32 = vector.broadcast %cst_18 : f32 to vector<2x4x128xf32>
    %33 = arith.maximumf %31, %32 : vector<2x4x128xf32>
    %cst_19 = arith.constant 0.000000e+00 : f32
    %34 = vector.broadcast %cst_19 : f32 to vector<2x4x130xf32>
    %c0_20 = arith.constant 0 : index
    %c0_21 = arith.constant 0 : index
    %c0_22 = arith.constant 0 : index
    %35 = vector.load %arg7[%c0_20, %c0_21, %c0_22] : memref<2x4x130xf32, #tpu.memory_space<vmem>>, vector<2x4x130xf32>
    tpu.vector_store %arg7[%c0_20, %c0_21, %c0_22], %34 {strides = array<i32>} : memref<2x4x130xf32, #tpu.memory_space<vmem>>, vector<2x4x130xf32>,
    %c0_23 = arith.constant 0 : index
    %c0_24 = arith.constant 0 : index
    %c1 = arith.constant 1 : index
    %36 = vector.load %arg7[%c0_23, %c0_24, %c1] : memref<2x4x130xf32, #tpu.memory_space<vmem>>, vector<2x4x128xf32>
    tpu.vector_store %arg7[%c0_23, %c0_24, %c1], %33 {strides = array<i32>} : memref<2x4x130xf32, #tpu.memory_space<vmem>>, vector<2x4x128xf32>,
    %cst_25 = arith.constant 0.000000e+00 : f32
    %37 = vector.broadcast %cst_25 : f32 to vector<2x8x128xf32>
    %c0_26 = arith.constant 0 : index
    %c0_27 = arith.constant 0 : index
    %c0_28 = arith.constant 0 : index
    %38 = vector.load %arg7[%c0_26, %c0_27, %c0_28] : memref<2x4x130xf32, #tpu.memory_space<vmem>>, vector<2x4x128xf32>
    %39 = vector.extract_strided_slice %24 {offsets = [0, 0, 0], sizes = [1, 8, 4], strides = [1, 1, 1]} : vector<3x8x4xf32> to vector<1x8x4xf32>
    %40 = vector.shape_cast %39 : vector<1x8x4xf32> to vector<8x4xf32>
    %41 = vector.shape_cast %40 : vector<8x4xf32> to vector<1x8x4xf32>
    %42 = vector.broadcast %41 : vector<1x8x4xf32> to vector<2x8x4xf32>
    "tpu.trace_start"() <{level = 10 : i32, message = "noi,nil->nol"}> : () -> ()
    %cst_29 = arith.constant dense<0.000000e+00> : vector<2x8x128xf32>
    %43 = tpu.matmul %42, %38, %cst_29 {dimension_numbers = #tpu.dot_dimension_numbers<[2], [1], [1], [2], [0, 0, 0, 1, 1, 2], [0], [0]>, precision = #tpu.contract_precision<fp32>} : vector<2x8x4xf32>, vector<2x4x128xf32>, vector<2x8x128xf32> -> vector<2x8x128xf32>
    "tpu.trace_stop"() : () -> ()
    %44 = arith.addf %37, %43 : vector<2x8x128xf32>
    %c0_30 = arith.constant 0 : index
    %c0_31 = arith.constant 0 : index
    %c1_32 = arith.constant 1 : index
    %45 = vector.load %arg7[%c0_30, %c0_31, %c1_32] : memref<2x4x130xf32, #tpu.memory_space<vmem>>, vector<2x4x128xf32>
    %46 = vector.extract_strided_slice %24 {offsets = [1, 0, 0], sizes = [1, 8, 4], strides = [1, 1, 1]} : vector<3x8x4xf32> to vector<1x8x4xf32>
    %47 = vector.shape_cast %46 : vector<1x8x4xf32> to vector<8x4xf32>
    %48 = vector.shape_cast %47 : vector<8x4xf32> to vector<1x8x4xf32>
    %49 = vector.broadcast %48 : vector<1x8x4xf32> to vector<2x8x4xf32>
    "tpu.trace_start"() <{level = 10 : i32, message = "noi,nil->nol"}> : () -> ()
    %cst_33 = arith.constant dense<0.000000e+00> : vector<2x8x128xf32>
    %50 = tpu.matmul %49, %45, %cst_33 {dimension_numbers = #tpu.dot_dimension_numbers<[2], [1], [1], [2], [0, 0, 0, 1, 1, 2], [0], [0]>, precision = #tpu.contract_precision<fp32>} : vector<2x8x4xf32>, vector<2x4x128xf32>, vector<2x8x128xf32> -> vector<2x8x128xf32>
    "tpu.trace_stop"() : () -> ()
    %51 = arith.addf %44, %50 : vector<2x8x128xf32>
    %c0_34 = arith.constant 0 : index
    %c0_35 = arith.constant 0 : index
    %c2 = arith.constant 2 : index
    %52 = vector.load %arg7[%c0_34, %c0_35, %c2] : memref<2x4x130xf32, #tpu.memory_space<vmem>>, vector<2x4x128xf32>
    %53 = vector.extract_strided_slice %24 {offsets = [2, 0, 0], sizes = [1, 8, 4], strides = [1, 1, 1]} : vector<3x8x4xf32> to vector<1x8x4xf32>
    %54 = vector.shape_cast %53 : vector<1x8x4xf32> to vector<8x4xf32>
    %55 = vector.shape_cast %54 : vector<8x4xf32> to vector<1x8x4xf32>
    %56 = vector.broadcast %55 : vector<1x8x4xf32> to vector<2x8x4xf32>
    "tpu.trace_start"() <{level = 10 : i32, message = "noi,nil->nol"}> : () -> ()
    %cst_36 = arith.constant dense<0.000000e+00> : vector<2x8x128xf32>
    %57 = tpu.matmul %56, %52, %cst_36 {dimension_numbers = #tpu.dot_dimension_numbers<[2], [1], [1], [2], [0, 0, 0, 1, 1, 2], [0], [0]>, precision = #tpu.contract_precision<fp32>} : vector<2x8x4xf32>, vector<2x4x128xf32>, vector<2x8x128xf32> -> vector<2x8x128xf32>
    "tpu.trace_stop"() : () -> ()
    %58 = arith.addf %51, %57 : vector<2x8x128xf32>
    %59 = vector.shape_cast %25 : vector<8x1xf32> to vector<1x8x1xf32>
    %60 = vector.broadcast %59 : vector<1x8x1xf32> to vector<2x8x128xf32>
    %61 = arith.addf %58, %60 : vector<2x8x128xf32>
    %c0_37 = arith.constant 0 : index
    %c0_38 = arith.constant 0 : index
    %c0_39 = arith.constant 0 : index
    %62 = vector.load %arg6[%c0_37, %c0_38, %c0_39] : memref<2x8x128xf32, #tpu.memory_space<vmem>>, vector<2x8x128xf32>
    tpu.vector_store %arg6[%c0_37, %c0_38, %c0_39], %61 {strides = array<i32>} : memref<2x8x128xf32, #tpu.memory_space<vmem>>, vector<2x8x128xf32>,
    return
  }
  func.func @transform_0(%arg0: i32) -> (i32, i32, i32) {
    %c0_i32 = arith.constant 0 : i32
    %c0_i32_0 = arith.constant 0 : i32
    %c0_i32_1 = arith.constant 0 : i32
    %c0_i32_2 = arith.constant 0 : i32
    return %c0_i32, %c0_i32_0, %c0_i32_1 : i32, i32, i32
  }
  func.func @transform_1(%arg0: i32) -> (i32, i32) {
    %c0_i32 = arith.constant 0 : i32
    %c0_i32_0 = arith.constant 0 : i32
    %c0_i32_1 = arith.constant 0 : i32
    return %c0_i32, %c0_i32_0 : i32, i32
  }
  func.func @transform_2(%arg0: i32) -> (i32, i32) {
    %c0_i32 = arith.constant 0 : i32
    %c0_i32_0 = arith.constant 0 : i32
    %c0_i32_1 = arith.constant 0 : i32
    return %c0_i32, %c0_i32_0 : i32, i32
  }
  func.func @transform_3(%arg0: i32) -> (i32, i32, i32) {
    %c0_i32 = arith.constant 0 : i32
    %c0_i32_0 = arith.constant 0 : i32
    %c0_i32_1 = arith.constant 0 : i32
    %c0_i32_2 = arith.constant 0 : i32
    return %c0_i32, %c0_i32_0, %c0_i32_1 : i32, i32, i32
  }
  func.func @transform_4(%arg0: i32) -> (i32, i32) {
    %c0_i32 = arith.constant 0 : i32
    %c0_i32_0 = arith.constant 0 : i32
    %c0_i32_1 = arith.constant 0 : i32
    return %c0_i32, %c0_i32_0 : i32, i32
  }
  func.func @transform_5(%arg0: i32) -> (i32, i32, i32) {
    %c0_i32 = arith.constant 0 : i32
    %c0_i32_0 = arith.constant 0 : i32
    %c0_i32_1 = arith.constant 0 : i32
    %c0_i32_2 = arith.constant 0 : i32
    return %c0_i32, %c0_i32_0, %c0_i32_1 : i32, i32, i32
  }
}

</mosaic_0001>

<bundles_post_ra>
// kernel: tpu_custom_call.1
= control target key start
LH: loop header
LB: loop body
LE: loop exit
PB: predicated region body
PF: predicated region fallthrough
CT: control target
= control target key end

     0   :  { %vm23_vm0 = vcmask 1043456   ;;  %s1243_s0 = inlined_call_operand.vmem [shape: f32[2,4,128], index: 0, kind: input, shape index: {}]   ;;  %s1244_s1 = inlined_call_operand.vmem [shape: f32[4,1], index: 1, kind: input, shape index: {}]   ;;  %s1245_s2 = inlined_call_operand.vmem [shape: f32[4,1], index: 2, kind: input, shape index: {}]   ;;  %s1246_s3 = inlined_call_operand.vmem [shape: f32[3,8,4], index: 3, kind: input, shape index: {}]   ;;  %s1247_s4 = inlined_call_operand.vmem [shape: f32[8,1], index: 4, kind: input, shape index: {}]   ;;  %s1248_s5 = inlined_call_operand.hbm [shape: f32[2,8,128], index: 5, kind: output, shape index: {}]  }
   0x1   :  { %v21_v0 = vld [vmem:[%s1243_s0] sm:$0xf]  ;;  %v22_v1 = vld [vmem:[%s1243_s0 + $0x4] sm:$0xf] }
   0x2   :  { %v24_v2 = vsel %vm23_vm0, %v21_v0, 0.0  ;;  %v25_v3 = vsel %vm23_vm0, %v22_v1, 0.0  ;;  %v27_v4 = vmul.f32 %v21_v0, %v21_v0  ;;  %v28_v5 = vmul.f32 %v22_v1, %v22_v1 }
   0x3   :  { %10 = vsyncpa [#allocation4], 0  ;;  %v26_v6 = vadd.f32 %v25_v3, %v24_v2  ;;  %v1112_v12 = vmov 0   ;;  %v38_v26 = vld [vmem:[%s1244_s1] sm:$0xf]  ;;  %vm79_vm4 = vcmask 15364  }
   0x4   :  { %v29_v7 = vsel %vm23_vm0, %v27_v4, 0.0  ;;  %v30_v8 = vsel %vm23_vm0, %v28_v5, 0.0  ;;  %1082 = vset.pattern.permute.xlu1 %v1112_v12  ;;  %1083 = vset.pattern.permute.xlu0 %v1112_v12  ;;  %v39_v31 = vld [vmem:[%s1245_s2] sm:$0xf]  ;;  %vm80_vm5 = vmor %vm79_vm4, %vm23_vm0  ;;  %v1113_v33 = vmov 0.0   ;;  %s1114_s1 = smov 1  }
   0x5   :  { %v32_v9 = vsel %vm23_vm0, %v26_v6, 0.0  ;;  %v31_v10 = vadd.f32 %v30_v8, %v29_v7  ;;  %81 = vst.msk [vmem:[#allocation2] sm:$0xff] %vm80_vm5, %v1113_v33  ;;  %vm96_vm6 = vcmask 1043464   ;;  %vm97_vm7 = vcmask 7172   ;;  %s1115_s2 = smov 127   ;;  %s1116_s25 = smov 126  }
   0x6   :  { %33 = vadd.xlane.f32.xlu0 %v32_v9  ;;  %82 = vst.msk [vmem:[#allocation2 + $0x8] sm:$0xff] %vm80_vm5, %v1113_v33  ;;  %vm91_vm8 = vcmask 7168   ;;  %vm98_vm9 = vmor %vm97_vm7, %vm96_vm6  ;;  %v62_v56 = vld [vmem:[%s1247_s4] sm:$0xff]  ;;  %v60_v59 = vld [vmem:[%s1246_s3 + $0x8] sm:$0xff]  ;;  %vm115_vm10 = vcmask 31744   ;;  %vm113_vm11 = vcmask 1039360  }
   0x7   :  { %v35_v11 = vsel %vm23_vm0, %v31_v10, 0.0  ;;  %v117_v60 = vsel %vm115_vm10, %v60_v59, 0  ;;  %v59_v10 = vld [vmem:[%s1246_s3] sm:$0xff]  ;;  %vm735_vm12 = vcmask 1031168   ;;  %s1062_s11 = sshll.u32 %s1248_s5, 4  ;;  %s1118_s12 = smov 128   ;;  %s1063_s11 = int_to_ptr.hbm [resolvable:$true] %s1062_s11 }
   0x8   :  { %v1176_v61 = vand.u32 4294901760, %v117_v60  ;;  %s1119_s13 = smov 8  }
   0xa   :  { %v1179_v62 = vsub.f32 %v117_v60, %v1176_v61 }
   0xc   :  { %v1182_v63 = vand.u32 4294901760, %v1179_v62 }
   0xe   :  { %36 = vadd.xlane.f32.xlu0 %v35_v11 }
  0x79   :  { %v34_v13 = vpop.xlane.xlu0 %33 }
  0x7a   :  { %v40_v14 = vmul.f32 0.00390625, %v34_v13 }
  0x7c   :  { %v42_v16 = vmul.f32 %v40_v14, %v40_v14 }
  0x81   :  { %v37_v15 = vpop.xlane.xlu0 %36 }
  0x82   :  { %v41_v17 = vmul.f32 0.00390625, %v37_v15 }
  0x84   :  { %v43_v18 = vsub.f32 %v41_v17, %v42_v16 }
  0x86   :  { %v44_v19 = vmax.f32 %v43_v18, 0.0 }
  0x88   :  { %v45_v20 = vadd.f32 1e-05, %v44_v19 }
  0x8a   :  { %1084 = vrsqrt.f32 %v45_v20  ;;  %vm52_vm2 = vweird.f32 %v45_v20 }
  0x90   :  { %v1085_v21 = vpop.eup %1084 }
  0x91   :  { %v47_v22 = vmul.f32 %v1085_v21, %v45_v20  ;;  %vm53_vm1 = vweird.f32 %v1085_v21 }
  0x92   :  { %vm54_vm3 = vmor %vm52_vm2, %vm53_vm1 }
  0x93   :  { %v48_v23 = vmul.f32 %v1085_v21, %v47_v22 }
  0x95   :  { %v49_v24 = vmul.f32 0.5, %v48_v23 }
  0x97   :  { %v50_v25 = vsub.f32 1.5, %v49_v24 }
  0x99   :  { %v51_v27 = vmul.f32 %v1085_v21, %v50_v25 }
  0x9b   :  { %v55_v28 = vsel %vm54_vm3, %v1085_v21, %v51_v27 }
  0x9c   :  { %v56_v29 = vmul.f32 %v55_v28, %v38_v26 }
  0x9e   :  { %65 = vperm.xlu1 %1082, %v56_v29   ;;  %v57_v30 = vmul.f32 %v56_v29, %v40_v14  ;;  %v425_v14 = vsel %vm115_vm10, %v59_v10, 0 }
  0x9f   :  { %v1200_v21 = vand.u32 4294901760, %v425_v14 }
  0xa0   :  { %v58_v32 = vsub.f32 %v39_v31, %v57_v30 }
  0xa1   :  { %v1206_v29 = vsub.f32 %v425_v14, %v1200_v21 }
  0xa6   :  { %72 = vperm.xlu1 %1082, %v58_v32  }
 0x110   :  { %v66_v34 = vpop.permute.xlu1 %65 }
 0x111   :  { %v68_v35 = vmul.f32 %v66_v34, %v21_v0  ;;  %v69_v39 = vmul.f32 %v66_v34, %v22_v1  ;;  %v141_v0 = vsub.f32 %v1179_v62, %v1182_v63  ;;  %v1210_v34 = vand.u32 4294901760, %v1206_v29 }
 0x113   :  { %v142_v6 = vand.u32 4294901760, %v141_v0 }
 0x118   :  { %v73_v36 = vpop.permute.xlu1 %72 }
 0x119   :  { %v75_v37 = vadd.f32 %v73_v36, %v68_v35  ;;  %v76_v40 = vadd.f32 %v73_v36, %v69_v39 }
 0x11b   :  { %v77_v38 = vmax.f32 %v75_v37, 0.0  ;;  %v78_v41 = vmax.f32 %v76_v40, 0.0  ;;  %v450_v40 = vsub.f32 %v1206_v29, %v1210_v34 }
 0x11d   :  { %85 = vrot.lane.b32.xlu2 %v77_v38, %s1114_s1 }
 0x125   :  { %87 = vrot.lane.b32.xlu2 %v78_v41, %s1114_s1 }
 0x177   :  { %v86_v42 = vpop.permute.xlu2 %85 }
 0x178   :  { %v89_v43 = vrot.slane %v86_v42, 4 }
 0x17a   :  { %v92_v44 = vsel %vm91_vm8, %v89_v43, %v86_v42  ;;  %v451_v43 = vand.u32 4294901760, %v450_v40 }
 0x17b   :  { %99 = vst.msk [vmem:[#allocation2] sm:$0xff] %vm98_vm9, %v92_v44  ;;  %v61_v44 = vld [vmem:[%s1246_s3 + $0x10] sm:$0xff]  ;;  %s1117_s3 = smov [#allocation3]  }
 0x17c   :  { %s1060_s8 = sshll.u32 %s1117_s3, 4  ;;  %s1061_s8 = int_to_ptr.vmem [resolvable:$true] %s1060_s8 }
 0x17f   :  { %v88_v45 = vpop.permute.xlu2 %87 }
 0x180   :  { %v90_v46 = vrot.slane %v88_v45, 4 }
 0x182   :  { %v93_v47 = vsel %vm91_vm8, %v90_v46, %v88_v45  ;;  %v103_v48 = vld [vmem:[#allocation2] sm:$0xff] }
 0x183   :  { %100 = vst.msk [vmem:[#allocation2 + $0x8] sm:$0xff] %vm98_vm9, %v93_v47  ;;  %v101_v3 = vld [vmem:[#allocation2] sm:$0xf] }
 0x184   :  { %106 = vst [vmem:[#allocation1] ss:$2 sm:$0xff] %v103_v48  ;;  %v428_v8 = vsel %vm23_vm0, %v101_v3, 0 }
 0x185   :  { %v1193_v11 = vand.u32 4294901760, %v428_v8 }
 0x187   :  { %v472_v20 = vsub.f32 %v428_v8, %v1193_v11 }
 0x189   :  { %v473_v26 = vand.u32 4294901760, %v472_v20 }
 0x18a   :  { %v104_v49 = vld [vmem:[#allocation2 + $0x8] sm:$0xff] }
 0x18b   :  { %v108_v50 = vld.sshfl [vmem:[#allocation1 + $0x8] sm:$0xff pattern:$0x75316420]  ;;  %v107_v51 = vld.sshfl [vmem:[#allocation1] sm:$0xff pattern:$0x75316420]  ;;  %v474_v31 = vsub.f32 %v472_v20, %v473_v26 }
 0x18c   :  { %111 = vrot.lane.b32.xlu1 %v108_v50, %s1115_s2  ;;  %109 = vrot.lane.b32.xlu0 %v107_v51, %s1115_s2  ;;  %268 = vst [vmem:[#allocation1] ss:$2 sm:$0xff] %v104_v49  ;;  %v102_v16 = vld [vmem:[#allocation2 + $0x8] sm:$0xf] }
 0x18d   :  { %v577_v24 = vsel %vm23_vm0, %v102_v16, 0  ;;  %v475_v37 = vand.u32 4294901760, %v474_v31 }
 0x18e   :  { %v594_v27 = vand.u32 4294901760, %v577_v24 }
 0x190   :  { %v621_v32 = vsub.f32 %v577_v24, %v594_v27 }
 0x192   :  { %v622_v38 = vand.u32 4294901760, %v621_v32 }
 0x193   :  { %v270_v52 = vld.sshfl [vmem:[#allocation1 + $0x8] sm:$0xff pattern:$0x75316420]  ;;  %v269_v53 = vld.sshfl [vmem:[#allocation1] sm:$0xff pattern:$0x75316420] }
 0x194   :  { %273 = vrot.lane.b32.xlu1 %v270_v52, %s1115_s2  ;;  %271 = vrot.lane.b32.xlu2 %v269_v53, %s1115_s2  ;;  %728 = vst [vmem:[#allocation1] ss:$2 sm:$0xff] %v103_v48  ;;  %v623_v42 = vsub.f32 %v621_v32, %v622_v38 }
 0x196   :  { %v624_v47 = vand.u32 4294901760, %v623_v42 }
 0x19b   :  { %v730_v54 = vld.sshfl [vmem:[#allocation1 + $0x8] sm:$0xff pattern:$0x75316420]  ;;  %v729_v55 = vld.sshfl [vmem:[#allocation1] sm:$0xff pattern:$0x75316420] }
 0x19c   :  { %733 = vrot.lane.b32.xlu1 %v730_v54, %s1116_s25  ;;  %731 = vrot.lane.b32.xlu2 %v729_v55, %s1116_s25  ;;  %889 = vst [vmem:[#allocation1] ss:$2 sm:$0xff] %v104_v49  ;;  %v738_v49 = vsel %vm115_vm10, %v61_v44, 0 }
 0x19d   :  { %v759_v52 = vand.u32 4294901760, %v738_v49 }
 0x1a3   :  { %v891_v57 = vld.sshfl [vmem:[#allocation1 + $0x8] sm:$0xff pattern:$0x75316420]  ;;  %v890_v58 = vld.sshfl [vmem:[#allocation1] sm:$0xff pattern:$0x75316420] }
 0x1a4   :  { %1049 = vperm.xlu1 %1082, %v62_v56   ;;  %894 = vrot.lane.b32.xlu0 %v891_v57, %s1116_s25  ;;  %v760_v56 = vsub.f32 %v738_v49, %v759_v52 }
 0x1a5   :  { %892 = vrot.lane.b32.xlu2 %v890_v58, %s1116_s25 }
 0x1a6   :  { %v761_v59 = vand.u32 4294901760, %v760_v56 }
 0x1ee   :  { %v272_v13 = vpop.permute.xlu2 %271 }
 0x1f6   :  { %v732_v36 = vpop.permute.xlu2 %731 }
 0x1fe   :  { %v112_v1 = vpop.permute.xlu1 %111  ;;  %v110_v2 = vpop.permute.xlu0 %109 }
 0x1ff   :  { %v114_v4 = vsel %vm113_vm11, %v110_v2, %v112_v1  ;;  %v893_v48 = vpop.permute.xlu2 %892 }
 0x200   :  { %v119_v5 = vsel %vm23_vm0, %v114_v4, 0 }
 0x201   :  { %v136_v7 = vand.u32 4294901760, %v119_v5 }
 0x203   :  { %v163_v9 = vsub.f32 %v119_v5, %v136_v7  ;;  %137 = vmatpush.msra.mxu0 %v136_v7  ;;  %213 = vmatpush.msra.mxu3 %v136_v7 }
 0x204   :  { %143 = vmatmul.f32.vlgmr.msra.gmra.mxu0 %v142_v6  ;;  %217 = vmatmul.f32.vlgmr.msra.gmra.mxu3 %v1182_v63 }
 0x205   :  { %190 = vmatpush.msra.mxu2 %v163_v9  ;;  %v164_v12 = vand.u32 4294901760, %v163_v9 }
 0x206   :  { %193 = vmatmul.f32.vlgmr.msra.gmra.mxu2 %v1179_v62  ;;  %v274_v15 = vpop.permute.xlu1 %273 }
 0x207   :  { %v275_v17 = vsel %vm113_vm11, %v272_v13, %v274_v15  ;;  %239 = vmatpush.msrb.mxu0 %v164_v12  ;;  %v165_v18 = vsub.f32 %v163_v9, %v164_v12 }
 0x208   :  { %v276_v19 = vsel %vm23_vm0, %v275_v17, 0 }
 0x209   :  { %v293_v22 = vand.u32 4294901760, %v276_v19  ;;  %v166_v23 = vand.u32 4294901760, %v165_v18 }
 0x20b   :  { %v320_v25 = vsub.f32 %v276_v19, %v293_v22  ;;  %167 = vmatpush.msra.mxu1 %v166_v23  ;;  %294 = vmatpush.msrb.mxu2 %v293_v22 }
 0x20c   :  { %169 = vmatmul.f32.vlgmr.msra.gmra.mxu1 %v1176_v61  ;;  %241 = vmatmul.f32.vlgmr.msrb.gmra.mxu0 %v1176_v61 }
 0x20d   :  { %261 = vmatpush.msrb.mxu1 %v136_v7  ;;  %347 = vmatpush.msra.mxu0 %v320_v25  ;;  %v321_v28 = vand.u32 4294901760, %v320_v25 }
 0x20e   :  { %300 = vmatmul.f32.vlgmr.msrb.gmra.mxu2 %v142_v6  ;;  %v734_v35 = vpop.permute.xlu1 %733 }
 0x20f   :  { %370 = vmatpush.msra.mxu1 %v293_v22  ;;  %446 = vmatpush.msrb.mxu0 %v1193_v11  ;;  %v322_v30 = vsub.f32 %v320_v25, %v321_v28  ;;  %v736_v39 = vsel %vm735_vm12, %v732_v36, %v734_v35 }
 0x210   :  { %396 = vmatpush.msra.mxu2 %v321_v28  ;;  %v740_v41 = vsel %vm23_vm0, %v736_v39, 0 }
 0x211   :  { %v323_v33 = vand.u32 4294901760, %v322_v30  ;;  %v757_v45 = vand.u32 4294901760, %v740_v41 }
 0x212   :  { %499 = vmatpush.msrb.mxu2 %v472_v20 }
 0x213   :  { %324 = vmatpush.msrb.mxu3 %v323_v33  ;;  %v784_v51 = vsub.f32 %v740_v41, %v757_v45 }
 0x214   :  { %263 = vmatmul.f32.vlgmr.msrb.gmra.mxu1 %v1176_v61  ;;  %326 = vmatmul.f32.vlgmr.msrb.gmra.mxu3 %v1176_v61 }
 0x215   :  { %350 = vmatmul.f32.vlgmr.msra.gmra.mxu0 %v1179_v62  ;;  %418 = vmatpush.msra.mxu3 %v293_v22  ;;  %v785_v54 = vand.u32 4294901760, %v784_v51  ;;  %v762_v62 = vsub.f32 %v760_v56, %v761_v59 }
 0x216   :  { %476 = vmatpush.msrb.mxu1 %v475_v37  ;;  %548 = vmatpush.msra.mxu0 %v473_v26  ;;  %v895_v46 = vpop.permute.xlu0 %894 }
 0x217   :  { %522 = vmatpush.msrb.mxu3 %v1193_v11  ;;  %398 = vmatmul.f32.vlgmr.msra.gmra.mxu2 %v1176_v61  ;;  %v896_v50 = vsel %vm735_vm12, %v893_v48, %v895_v46  ;;  %v786_v57 = vsub.f32 %v784_v51, %v785_v54  ;;  %v763_v0 = vand.u32 4294901760, %v762_v62 }
 0x218   :  { %595 = vmatpush.msra.mxu2 %v594_v27  ;;  %v897_v53 = vsel %vm23_vm0, %v896_v50, 0 }
 0x219   :  { %v914_v55 = vand.u32 4294901760, %v897_v53  ;;  %v787_v60 = vand.u32 4294901760, %v786_v57  ;;  %v1050_v57 = vpop.permute.xlu1 %1049 }
 0x21b   :  { %v941_v58 = vsub.f32 %v897_v53, %v914_v55 }
 0x21c   :  { %374 = vmatmul.f32.vlgmr.msra.gmra.mxu1 %v1182_v63  ;;  %420 = vmatmul.f32.vlgmr.msra.gmra.mxu3 %v1176_v61 }
 0x21d   :  { %452 = vmatmul.f32.vlgmr.msrb.gmra.mxu0 %v451_v43  ;;  %570 = vmatpush.msra.mxu1 %v1193_v11  ;;  %v942_v61 = vand.u32 4294901760, %v941_v58 }
 0x21e   :  { %625 = vmatpush.msra.mxu3 %v624_v47  ;;  %648 = vmatpush.msrb.mxu0 %v621_v32 }
 0x21f   :  { %502 = vmatmul.f32.vlgmr.msrb.gmra.mxu2 %v1206_v29  ;;  %v943_v63 = vsub.f32 %v941_v58, %v942_v61 }
 0x220   :  { %697 = vmatpush.msrb.mxu2 %v622_v38 }
 0x221   :  { %v944_v1 = vand.u32 4294901760, %v943_v63 }
 0x224   :  { %478 = vmatmul.f32.vlgmr.msrb.gmra.mxu1 %v1200_v21  ;;  %526 = vmatmul.f32.vlgmr.msrb.gmra.mxu3 %v1210_v34 }
 0x225   :  { %550 = vmatmul.f32.vlgmr.msra.gmra.mxu0 %v1200_v21  ;;  %671 = vmatpush.msrb.mxu1 %v594_v27 }
 0x226   :  { %719 = vmatpush.msrb.mxu3 %v594_v27  ;;  %758 = vmatpush.msra.mxu0 %v757_v45 }
 0x227   :  { %601 = vmatmul.f32.vlgmr.msra.gmra.mxu2 %v451_v43 }
 0x228   :  { %811 = vmatpush.msra.mxu2 %v784_v51 }
 0x22c   :  { %572 = vmatmul.f32.vlgmr.msra.gmra.mxu1 %v1200_v21  ;;  %627 = vmatmul.f32.vlgmr.msra.gmra.mxu3 %v1200_v21 }
 0x22d   :  { %651 = vmatmul.f32.vlgmr.msrb.gmra.mxu0 %v1206_v29  ;;  %788 = vmatpush.msra.mxu1 %v787_v60 }
 0x22e   :  { %834 = vmatpush.msra.mxu3 %v757_v45  ;;  %860 = vmatpush.msrb.mxu0 %v785_v54 }
 0x22f   :  { %699 = vmatmul.f32.vlgmr.msrb.gmra.mxu2 %v1200_v21 }
 0x230   :  { %915 = vmatpush.msrb.mxu2 %v914_v55 }
 0x234   :  { %675 = vmatmul.f32.vlgmr.msrb.gmra.mxu1 %v1210_v34  ;;  %721 = vmatmul.f32.vlgmr.msrb.gmra.mxu3 %v1200_v21 }
 0x235   :  { %764 = vmatmul.f32.vlgmr.msra.gmra.mxu0 %v763_v0  ;;  %882 = vmatpush.msrb.mxu1 %v757_v45 }
 0x236   :  { %945 = vmatpush.msrb.mxu3 %v944_v1  ;;  %968 = vmatpush.msra.mxu0 %v941_v58 }
 0x237   :  { %814 = vmatmul.f32.vlgmr.msra.gmra.mxu2 %v760_v56 }
 0x238   :  { %1017 = vmatpush.msra.mxu2 %v942_v61 }
 0x23c   :  { %790 = vmatmul.f32.vlgmr.msra.gmra.mxu1 %v759_v52  ;;  %838 = vmatmul.f32.vlgmr.msra.gmra.mxu3 %v761_v59 }
 0x23d   :  { %991 = vmatpush.msra.mxu1 %v914_v55  ;;  %1039 = vmatpush.msra.mxu3 %v914_v55 }
 0x23e   :  { %862 = vmatmul.f32.vlgmr.msrb.gmra.mxu0 %v759_v52 }
 0x23f   :  { %921 = vmatmul.f32.vlgmr.msrb.gmra.mxu2 %v763_v0 }
 0x244   :  { %947 = vmatmul.f32.vlgmr.msrb.gmra.mxu3 %v759_v52  ;;  %884 = vmatmul.f32.vlgmr.msrb.gmra.mxu1 %v759_v52 }
 0x246   :  { %971 = vmatmul.f32.vlgmr.msra.gmra.mxu0 %v760_v56 }
 0x247   :  { %1019 = vmatmul.f32.vlgmr.msra.gmra.mxu2 %v759_v52 }
 0x24c   :  { %1041 = vmatmul.f32.vlgmr.msra.gmra.mxu3 %v759_v52  ;;  %995 = vmatmul.f32.vlgmr.msra.gmra.mxu1 %v761_v59 }
 0x281   :  { %v144_v2 = vpop.f32.mrf.mxu0 }
 0x287   :  { %v218_v6 = vpop.f32.mrf.mxu3 }
 0x289   :  { %v170_v3 = vpop.f32.mrf.mxu1  ;;  %v194_v4 = vpop.f32.mrf.mxu2 }
 0x28a   :  { %v242_v5 = vpop.f32.mrf.mxu0  ;;  %v171_v16 = vadd.f32 %v170_v3, %v144_v2 }
 0x28c   :  { %v195_v19 = vadd.f32 %v194_v4, %v171_v16 }
 0x28e   :  { %v219_v22 = vadd.f32 %v218_v6, %v195_v19 }
 0x290   :  { %v243_v26 = vadd.f32 %v242_v5, %v219_v22 }
 0x291   :  { %v264_v7 = vpop.f32.mrf.mxu1  ;;  %v301_v8 = vpop.f32.mrf.mxu2 }
 0x292   :  { %v351_v9 = vpop.f32.mrf.mxu0  ;;  %v265_v30 = vadd.f32 %v264_v7, %v243_v26 }
 0x297   :  { %v327_v10 = vpop.f32.mrf.mxu3 }
 0x298   :  { %v328_v25 = vadd.f32 %v327_v10, %v301_v8 }
 0x299   :  { %v375_v11 = vpop.f32.mrf.mxu1 }
 0x29a   :  { %v399_v12 = vpop.f32.mrf.mxu2  ;;  %v453_v13 = vpop.f32.mrf.mxu0  ;;  %v352_v28 = vadd.f32 %v351_v9, %v328_v25 }
 0x29b   :  { %v454_v34 = vadd.f32 %v453_v13, %v265_v30 }
 0x29c   :  { %v376_v33 = vadd.f32 %v375_v11, %v352_v28 }
 0x29e   :  { %v400_v37 = vadd.f32 %v399_v12, %v376_v33 }
 0x29f   :  { %v421_v14 = vpop.f32.mrf.mxu3 }
 0x2a0   :  { %v422_v42 = vadd.f32 %v421_v14, %v400_v37 }
 0x2a1   :  { %v479_v15 = vpop.f32.mrf.mxu1 }
 0x2a2   :  { %v503_v17 = vpop.f32.mrf.mxu2  ;;  %v551_v18 = vpop.f32.mrf.mxu0  ;;  %v480_v35 = vadd.f32 %v479_v15, %v454_v34 }
 0x2a4   :  { %v504_v39 = vadd.f32 %v503_v17, %v480_v35 }
 0x2a7   :  { %v527_v20 = vpop.f32.mrf.mxu3 }
 0x2a8   :  { %v528_v43 = vadd.f32 %v527_v20, %v504_v39 }
 0x2a9   :  { %v573_v21 = vpop.f32.mrf.mxu1 }
 0x2aa   :  { %v602_v23 = vpop.f32.mrf.mxu2  ;;  %v652_v24 = vpop.f32.mrf.mxu0  ;;  %v552_v48 = vadd.f32 %v551_v18, %v528_v43 }
 0x2ab   :  { %v603_v45 = vadd.f32 %v602_v23, %v422_v42 }
 0x2ac   :  { %v574_v54 = vadd.f32 %v573_v21, %v552_v48 }
 0x2af   :  { %v628_v27 = vpop.f32.mrf.mxu3 }
 0x2b0   :  { %v629_v49 = vadd.f32 %v628_v27, %v603_v45 }
 0x2b1   :  { %v676_v29 = vpop.f32.mrf.mxu1 }
 0x2b2   :  { %v700_v31 = vpop.f32.mrf.mxu2  ;;  %v765_v32 = vpop.f32.mrf.mxu0  ;;  %v653_v55 = vadd.f32 %v652_v24, %v629_v49 }
 0x2b4   :  { %v677_v61 = vadd.f32 %v676_v29, %v653_v55 }
 0x2b6   :  { %v701_v3 = vadd.f32 %v700_v31, %v677_v61 }
 0x2b7   :  { %v722_v36 = vpop.f32.mrf.mxu3 }
 0x2b8   :  { %v723_v7 = vadd.f32 %v722_v36, %v701_v3 }
 0x2b9   :  { %v791_v38 = vpop.f32.mrf.mxu1 }
 0x2ba   :  { %v792_v40 = vadd.f32 %v791_v38, %v765_v32  ;;  %v815_v41 = vpop.f32.mrf.mxu2 }
 0x2bb   :  { %v863_v44 = vpop.f32.mrf.mxu0 }
 0x2bc   :  { %v816_v46 = vadd.f32 %v815_v41, %v792_v40 }
 0x2bf   :  { %v839_v47 = vpop.f32.mrf.mxu3 }
 0x2c0   :  { %v840_v50 = vadd.f32 %v839_v47, %v816_v46 }
 0x2c1   :  { %v885_v51 = vpop.f32.mrf.mxu1 }
 0x2c2   :  { %v864_v52 = vadd.f32 %v863_v44, %v840_v50  ;;  %v922_v53 = vpop.f32.mrf.mxu2 }
 0x2c3   :  { %v972_v60 = vpop.f32.mrf.mxu0 }
 0x2c4   :  { %v886_v56 = vadd.f32 %v885_v51, %v864_v52 }
 0x2c6   :  { %v1045_v58 = vadd.f32 %v886_v56, %v574_v54 }
 0x2c7   :  { %v948_v59 = vpop.f32.mrf.mxu3 }
 0x2c8   :  { %v1052_v62 = vadd.f32 %v1050_v57, %v1045_v58  ;;  %v949_v63 = vadd.f32 %v948_v59, %v922_v53 }
 0x2c9   :  { %v996_v0 = vpop.f32.mrf.mxu1 }
 0x2ca   :  { %1054 = vst [vmem:[#allocation3] sm:$0xff] %v1052_v62  ;;  %v973_v1 = vadd.f32 %v972_v60, %v949_v63  ;;  %v1020_v2 = vpop.f32.mrf.mxu2 }
 0x2cc   :  { %v997_v4 = vadd.f32 %v996_v0, %v973_v1 }
 0x2ce   :  { %v1021_v5 = vadd.f32 %v1020_v2, %v997_v4 }
 0x2cf   :  { %v1042_v6 = vpop.f32.mrf.mxu3 }
 0x2d0   :  { %v1043_v8 = vadd.f32 %v1042_v6, %v1021_v5 }
 0x2d2   :  { %v1046_v9 = vadd.f32 %v1043_v8, %v723_v7 }
 0x2d4   :  { %v1053_v10 = vadd.f32 %v1050_v57, %v1046_v9 }
 0x2d6   :  { %1055 = vst [vmem:[#allocation3 + $0x8] sm:$0xff] %v1053_v10 }
 0x2d7   :  { %1068 = dma.vmem_to_hbm [thread:$0]  %s1061_s8, 256, %s1063_s11, [#allocation4], %s1118_s12, %s1118_s12, %s1119_s13  }
 0x2d8   :  { %1110 = dma.done.wait [#allocation4], 256  }
 0x2d9   :  { %1111 = vsyncadd [#allocation4], 4294967040 }
 0x2da   :  { %1073 = vsyncpa [#allocation4], 1 }

</bundles_post_ra>
